<compile_context>
chip_gen: v5e
topology: v5e:2x2
jax: 0.10.0
libtpu: 0.0.40
codegen_flags: <defaults>
</compile_context>

<pallas_src>
import functools

import jax
import jax.numpy as jnp
from jax.experimental import pallas as pl
from jax.experimental.pallas import tpu as pltpu

_MiB = 1024 * 1024


def _pow(x, p):
    """Static-exponent power; integer exponents avoid exp/log lowering."""
    pf = float(p)
    if pf.is_integer():
        pi = int(pf)
        if pi == 0:
            return jnp.ones_like(x)
        if pi == 1:
            return x
        if pi == 2:
            return x * x
        if pi == 3:
            return x * x * x
        if pi > 0:
            return x ** pi
    return x ** p  # float / negative exponent fallback (EUP transcendental path)


def _chip_info():
    """(tensorcores per chip, usable VMEM budget bytes) — conservative defaults."""
    try:
        kind = jax.devices()[0].device_kind.lower()
    except Exception:
        kind = ""
    if "v7" in kind:
        return 2, 44 * _MiB          # 64 MiB physical per TC, 2 TCs
    if "v5" in kind or "v6" in kind:
        return 1, 96 * _MiB          # 128 MiB physical, 1 TC
    return 1, 48 * _MiB              # unknown: stay safe everywhere


def _pick_tile(dim, preferred):
    for t in preferred:
        if t <= dim and dim % t == 0:
            return t
    return dim  # full-dim block (exempt from the (8,128) divisibility rule)


# ----------------------------- kernels ------------------------------------- #

def _hill_kernel(x_ref, hill_ref, *, h_exp):
    """Elementwise pre-pass: hill(x) = x^h / (1 + x^h); f32 math, op-dtype store."""
    x = x_ref[...].astype(jnp.float32)
    xh = _pow(x, h_exp)
    hill_ref[...] = (xh / (xh + 1.0)).astype(hill_ref.dtype)


def _mm_decay_kernel(b_ref, a_ref, hill_ref, xi_ref, o_ref, acc_ref,
                     *, f_exp, tk, resident):
    """One (i, j, k) grid step of  out = -b*x^f + A @ hill(x).

    b_ref   : (1, 1) f32 scalar in SMEM (dynamic b, no recompile per value)
    a_ref   : (tm, tk) A tile, block (i, k)
    hill_ref: resident -> (K, tn) hill(x) slab (block (0, j), one DMA per j)
              streaming -> (tk, tn) hill(x) tile (block (k, j))
    xi_ref  : (tm, tn) x tile, block (i, j) (k-invariant -> one DMA per output tile)
    acc_ref : (tm, tn) f32 VMEM accumulator, resident across the k axis
    """
    k = pl.program_id(2)

    @pl.when(k == 0)
    def _():
        xi = xi_ref[...].astype(jnp.float32)
        acc_ref[...] = (-b_ref[0, 0]) * _pow(xi, f_exp)

    if resident:
        start = pl.multiple_of(k * tk, tk)
        h_tile = hill_ref[pl.ds(start, tk), :]
    else:
        h_tile = hill_ref[...]

    acc_ref[...] += jnp.dot(a_ref[...], h_tile, preferred_element_type=jnp.float32)

    @pl.when(k == pl.num_programs(2) - 1)
    def _():
        o_ref[...] = acc_ref[...].astype(o_ref.dtype)


# ----------------------------- wrapper ------------------------------------- #

def _gene_dynamics_impl(A_op, x, b_arr, *, f_exp, h_exp):
    N, K = A_op.shape
    K2, D = x.shape
    assert K == K2, "A and x shapes are inconsistent"

    op_dtype = A_op.dtype
    op_bytes = jnp.dtype(op_dtype).itemsize
    x_bytes = jnp.dtype(x.dtype).itemsize
    num_cores, vmem_budget = _chip_info()

    # Lane-dense layout: pad feature dim to a multiple of 128 (zeros are exact:
    # hill(0)=0, decay of padded cols is sliced off afterwards).
    D_pad = ((D + 127) // 128) * 128
    x_p = x if D_pad == D else jnp.pad(x, ((0, 0), (0, D_pad - D)))

    # ---- tile selection (>=512 KiB A DMAs where shapes allow) ----
    tm = _pick_tile(N, (512, 256, 128))
    tk = _pick_tile(K, (1024, 512, 256, 128))
    tn_cands = [D_pad] + [t for t in (4096, 2048, 1024, 512, 256, 128)
                          if t < D_pad and D_pad % t == 0]

    def vmem_estimate(tn_, resident_):
        a_buf = 2 * tm * tk * op_bytes
        hill_buf = (2 * K * tn_ * op_bytes) if resident_ else (2 * tk * tn_ * op_bytes)
        xi_buf = 2 * tm * tn_ * x_bytes
        out_buf = 2 * tm * tn_ * x_bytes
        acc = tm * tn_ * 4
        return a_buf + hill_buf + xi_buf + out_buf + acc

    # Prefer the widest tn (fewest j-blocks -> A streamed once); within that,
    # prefer a VMEM-resident hill(x) slab (one hill DMA total per j-block).
    tn, resident = None, False
    for tn_ in tn_cands:
        if K * tn_ * op_bytes <= 8 * _MiB and vmem_estimate(tn_, True) <= vmem_budget:
            tn, resident = tn_, True
            break
        if vmem_estimate(tn_, False) <= vmem_budget:
            tn, resident = tn_, False
            break
    if tn is None:
        tn, resident = tn_cands[-1], False
        while (vmem_estimate(tn, False) > vmem_budget
               and tk > 128 and tk % 2 == 0 and K % (tk // 2) == 0):
            tk //= 2

    # Megacore: only shrink tm to expose >=2 parallel grid points on 2-TC chips.
    if num_cores >= 2:
        while ((N // tm) * (D_pad // tn) < num_cores and tm > 128
               and tm % 2 == 0 and N % (tm // 2) == 0):
            tm //= 2

    assert N % tm == 0 and K % tk == 0 and D_pad % tn == 0, "shapes must tile evenly"

    # ---- pre-pass: hill(x) computed once (f32 math, stored in MXU operand dtype) ----
    tk_pre = _pick_tile(K, (1024, 512, 256, 128))
    while (2 * tk_pre * D_pad * (x_bytes + op_bytes) > vmem_budget // 2
           and tk_pre > 8 and tk_pre % 2 == 0 and K % (tk_pre // 2) == 0):
        tk_pre //= 2

    hill = pl.pallas_call(
        functools.partial(_hill_kernel, h_exp=h_exp),
        out_shape=jax.ShapeDtypeStruct((K, D_pad), op_dtype),
        grid_spec=pltpu.PrefetchScalarGridSpec(
            num_scalar_prefetch=0,
            grid=(K // tk_pre,),
            in_specs=[pl.BlockSpec((tk_pre, D_pad), lambda i: (i, 0))],
            out_specs=pl.BlockSpec((tk_pre, D_pad), lambda i: (i, 0)),
        ),
        compiler_params=pltpu.CompilerParams(dimension_semantics=("parallel",)),
    )(x_p)

    # ---- main pass: fused A @ hill(x) + decay ----
    hill_spec = (pl.BlockSpec((K, tn), lambda i, j, k: (0, j)) if resident
                 else pl.BlockSpec((tk, tn), lambda i, j, k: (k, j)))

    vmem_est = vmem_estimate(tn, resident)
    vmem_limit = int(min(vmem_budget, max(vmem_est * 5 // 4 + 2 * _MiB, 16 * _MiB)))

    j_blocks = D_pad // tn
    cost = pl.CostEstimate(
        flops=2 * N * K * D_pad,
        transcendentals=0,
        bytes_accessed=(N * K * op_bytes * j_blocks   # A stream (re-read per j-block)
                        + K * D_pad * op_bytes        # hill(x)
                        + N * D_pad * x_bytes         # x (decay operand)
                        + N * D_pad * x_bytes),       # output
    )

    out = pl.pallas_call(
        functools.partial(_mm_decay_kernel, f_exp=f_exp, tk=tk, resident=resident),
        out_shape=jax.ShapeDtypeStruct((N, D_pad), x.dtype),
        grid_spec=pltpu.PrefetchScalarGridSpec(
            num_scalar_prefetch=0,
            grid=(N // tm, j_blocks, K // tk),
            in_specs=[
                pl.BlockSpec(memory_space=pltpu.MemorySpace.SMEM),   # b scalar
                pl.BlockSpec((tm, tk), lambda i, j, k: (i, k)),      # A tile
                hill_spec,                                           # hill(x)
                pl.BlockSpec((tm, tn), lambda i, j, k: (i, j)),      # x for decay
            ],
            out_specs=pl.BlockSpec((tm, tn), lambda i, j, k: (i, j)),
            scratch_shapes=[pltpu.VMEM((tm, tn), jnp.float32)],
        ),
        compiler_params=pltpu.CompilerParams(
            dimension_semantics=("parallel", "parallel", "arbitrary"),
            vmem_limit_bytes=vmem_limit,
        ),
        cost_estimate=cost,
    )(b_arr, A_op, hill, x_p)

    return out if D_pad == D else out[:, :D]


class GeneDynamicsTPU:
    """Pallas TPU port of the PyTorch GeneDynamics module (dense A only).

    A is cast to the MXU operand dtype ONCE at construction and reused on every
    __call__ (every ODE-integrator step), keeping the per-step HBM traffic to
    the kernel's own streams. b is fed via an SMEM scalar so varying b does not
    force a recompile.
    """

    def __init__(self, A, b, f=1, h=2, use_bf16=True):
        op_dtype = jnp.bfloat16 if use_bf16 else jnp.float32
        self.A_op = jnp.asarray(A).astype(op_dtype)
        self.b = jnp.full((1, 1), b, dtype=jnp.float32)
        self.f = f
        self.h = h

    def __call__(self, t, x):
        del t  # autonomous system: t accepted for API parity, unused
        return _gene_dynamics_impl(self.A_op, x, self.b, f_exp=self.f, h_exp=self.h)


def gene_dynamics(A, x, *, b=1.0, f_exp=1, h_exp=2, use_bf16=True):
    """One-shot functional form (casts A per call; prefer GeneDynamicsTPU in a loop)."""
    op_dtype = jnp.bfloat16 if use_bf16 else jnp.float32
    b_arr = jnp.full((1, 1), b, dtype=jnp.float32)
    return _gene_dynamics_impl(jnp.asarray(A).astype(op_dtype), x, b_arr,
                               f_exp=f_exp, h_exp=h_exp)


if __name__ == "__main__":
    # Small, tile-aligned shapes consistent with the module's (N, D) convention.
    N, D = 256, 128
    b, f_exp, h_exp = 1.0, 1, 2

    key = jax.random.PRNGKey(0)
    ka, kx = jax.random.split(key)
    A = jax.random.normal(ka, (N, N), dtype=jnp.float32) * 0.1   # dense coupling
    x = jax.random.uniform(kx, (N, D), dtype=jnp.float32)        # gene expression

    # TODO(synk): the torch.sparse.mm branch (sparse A) is not implemented; dense A only.
    model = GeneDynamicsTPU(A, b, f=f_exp, h=h_exp)   # bf16 cast of A happens once here
    out = model(0.0, x)
    out = jax.block_until_ready(out)
    assert out.shape == (N, D) and out.dtype == x.dtype

    # Full-f32 reference (loose tol: MXU operands are intentionally bf16).
    xh = x ** h_exp
    hill_f32 = xh / (xh + 1.0)
    ref_f32 = -b * (x ** f_exp) + A @ hill_f32
    assert jnp.allclose(out, ref_f32, atol=2e-2, rtol=2e-2), "mismatch vs f32 reference"

    # Matched-precision reference (same bf16 operand rounding, f32 accumulate).
    A_bf = A.astype(jnp.bfloat16).astype(jnp.float32)
    hill_bf = hill_f32.astype(jnp.bfloat16).astype(jnp.float32)
    ref_matched = -b * (x ** f_exp) + A_bf @ hill_bf
    assert jnp.allclose(out, ref_matched, atol=1e-4, rtol=1e-4), (
        "mismatch vs matched-precision reference"
    )

    print("KERNEL_OK")
</pallas_src>

<mosaic_0001>
module attributes {stable_mosaic.version = 11 : i64} {
  func.func @_hill_kernel(%arg0: i32, %arg1: memref<256x128xf32, #tpu.memory_space<vmem>>, %arg2: memref<256x128xbf16, #tpu.memory_space<vmem>>) attributes {dimension_semantics = [#tpu.dimension_semantics<parallel>], iteration_bounds = array<i64: 1>, scalar_prefetch = 0 : i64, scratch_operands = 0 : i64, tpu.core_type = #tpu.core_type<tc>, window_params = [{transform_indices = @transform_0, window_bounds = array<i64: 256, 128>}, {transform_indices = @transform_1, window_bounds = array<i64: 256, 128>}]} {
    %c0 = arith.constant 0 : index
    %c0_0 = arith.constant 0 : index
    %0 = vector.load %arg1[%c0, %c0_0] : memref<256x128xf32, #tpu.memory_space<vmem>>, vector<256x128xf32>
    %1 = arith.mulf %0, %0 : vector<256x128xf32>
    %cst = arith.constant 1.000000e+00 : f32
    %2 = vector.broadcast %cst : f32 to vector<256x128xf32>
    %3 = arith.addf %1, %2 : vector<256x128xf32>
    %4 = arith.divf %1, %3 : vector<256x128xf32>
    %5 = arith.truncf %4 : vector<256x128xf32> to vector<256x128xbf16>
    %c0_1 = arith.constant 0 : index
    %c0_2 = arith.constant 0 : index
    %6 = vector.load %arg2[%c0_1, %c0_2] : memref<256x128xbf16, #tpu.memory_space<vmem>>, vector<256x128xbf16>
    tpu.vector_store %arg2[%c0_1, %c0_2], %5 {strides = array<i32>} : memref<256x128xbf16, #tpu.memory_space<vmem>>, vector<256x128xbf16>,
    return
  }
  func.func @transform_0(%arg0: i32) -> (i32, i32) {
    %c0_i32 = arith.constant 0 : i32
    %c0_i32_0 = arith.constant 0 : i32
    return %arg0, %c0_i32 : i32, i32
  }
  func.func @transform_1(%arg0: i32) -> (i32, i32) {
    %c0_i32 = arith.constant 0 : i32
    %c0_i32_0 = arith.constant 0 : i32
    return %arg0, %c0_i32 : i32, i32
  }
}

</mosaic_0001>

<bundles_post_ra>
// kernel: tpu_custom_call.1
= control target key start
LH: loop header
LB: loop body
LE: loop exit
PB: predicated region body
PF: predicated region fallthrough
CT: control target
= control target key end

     0   :  { %6 = vsyncpa [#allocation3], 0  ;;  %s1677_s0 = inlined_call_operand.hbm [shape: f32[256,128], index: 0, kind: input, shape index: {}]   ;;  %s1678_s1 = inlined_call_operand.hbm [shape: bf16[256,128], index: 1, kind: output, shape index: {}]  }
   0x1   :  { %7 = vsyncpa [#allocation4], 0  ;;  %s12_s8 = sshll.u32 %s1677_s0, 4  ;;  %s901_s9 = smov [#allocation2]   ;;  %s13_s8 = int_to_ptr.hbm [resolvable:$true] %s12_s8 }
   0x2   :  { %s14_s10 = sshll.u32 %s901_s9, 4  ;;  %s902_s11 = smov 128   ;;  %s15_s10 = int_to_ptr.vmem [resolvable:$true] %s14_s10 }
   0x3   :  { %s903_s12 = smov 8  }
   0x4   :  { %20 = dma.hbm_to_vmem [thread:$0]  %s13_s8, 4096, %s15_s10, [#allocation3], %s902_s11, %s902_s11, %s903_s12  }
   0x5   :  { %897 = dma.done.wait [#allocation3], 4096  }
   0x6   :  { %898 = vsyncadd [#allocation3], 4294963200  ;;  %v25_v0 = vld [vmem:[#allocation2] sm:$0xff]  ;;  %v26_v1 = vld [vmem:[#allocation2 + $0x8] sm:$0xff]  ;;  %s904_s0 = smov [#allocation5]   ;;  %s671_s16 = sshll.u32 %s1678_s1, 4  ;;  %s672_s16 = int_to_ptr.hbm [resolvable:$true] %s671_s16 }
   0x7   :  { %v27_v2 = vld [vmem:[#allocation2 + $0x10] sm:$0xff]  ;;  %v920_v3 = vmul.f32 %v25_v0, %v25_v0  ;;  %v922_v4 = vmul.f32 %v26_v1, %v26_v1  ;;  %v28_v5 = vld [vmem:[#allocation2 + $0x18] sm:$0xff]  ;;  %v29_v7 = vld [vmem:[#allocation2 + $0x20] sm:$0xff]  ;;  %s669_s13 = sshll.u32 %s904_s0, 4  ;;  %s905_s17 = smov 64   ;;  %s670_s13 = int_to_ptr.vmem [resolvable:$true] %s669_s13 }
   0x8   :  { %v924_v6 = vmul.f32 %v27_v2, %v27_v2  ;;  %v30_v8 = vld [vmem:[#allocation2 + $0x28] sm:$0xff]  ;;  %v926_v9 = vmul.f32 %v28_v5, %v28_v5  ;;  %v928_v10 = vmul.f32 %v29_v7, %v29_v7  ;;  %v31_v15 = vld [vmem:[#allocation2 + $0x30] sm:$0xff]  ;;  %v32_v17 = vld [vmem:[#allocation2 + $0x38] sm:$0xff]  ;;  %s906_s18 = smov 4  }
   0x9   :  { %v89_v11 = vadd.f32 1.0, %v920_v3  ;;  %v932_v12 = vadd.f32 1.0, %v922_v4  ;;  %v937_v14 = vmul.f32 %v30_v8, %v30_v8  ;;  %v949_v23 = vmul.f32 %v31_v15, %v31_v15  ;;  %v34_v46 = vld [vmem:[#allocation2 + $0x48] sm:$0xff]  ;;  %v36_v50 = vld [vmem:[#allocation2 + $0x58] sm:$0xff] }
   0xa   :  { %v935_v13 = vadd.f32 1.0, %v924_v6  ;;  %v940_v16 = vadd.f32 1.0, %v926_v9  ;;  %v944_v20 = vadd.f32 1.0, %v928_v10  ;;  %v956_v27 = vmul.f32 %v32_v17, %v32_v17  ;;  %v38_v7 = vld [vmem:[#allocation2 + $0x68] sm:$0xff] }
   0xb   :  { %785 = vrcp.f32 %v89_v11  ;;  %v130_v18 = vand.u32 2147483647, %v89_v11  ;;  %v132_v19 = vand.u32 2147483648, %v89_v11  ;;  %v145_v21 = vand.u32 2147483647, %v932_v12 }
   0xc   :  { %787 = vrcp.f32 %v932_v12  ;;  %v147_v22 = vand.u32 2147483648, %v932_v12  ;;  %v160_v24 = vand.u32 2147483647, %v935_v13  ;;  %v162_v25 = vand.u32 2147483648, %v935_v13 }
   0xd   :  { %789 = vrcp.f32 %v935_v13  ;;  %v954_v26 = vadd.f32 1.0, %v937_v14  ;;  %vm126_vm0 = vweird.f32 %v89_v11  ;;  %vm141_vm1 = vweird.f32 %v932_v12 }
   0xe   :  { %791 = vrcp.f32 %v940_v16  ;;  %v177_v28 = vand.u32 2147483648, %v940_v16  ;;  %vm961_vm2 = vcmp.eq.f32.partialorder %v130_v18, 8.507059e+37  ;;  %v133_v30 = vor.u32 1.1754944e-38, %v132_v19 }
   0xf   :  { %vm156_vm3 = vweird.f32 %v935_v13  ;;  %v175_v31 = vand.u32 2147483647, %v940_v16  ;;  %793 = vrcp.f32 %v944_v20  ;;  %vm968_vm4 = vcmp.eq.f32.partialorder %v145_v21, 8.507059e+37 }
  0x10   :  { %v148_v34 = vor.u32 1.1754944e-38, %v147_v22  ;;  %vm171_vm5 = vweird.f32 %v940_v16  ;;  %v190_v35 = vand.u32 2147483647, %v944_v20  ;;  %v192_v36 = vand.u32 2147483648, %v944_v20 }
  0x11   :  { %v786_v32 = vpop.eup %785  ;;  %vm975_vm6 = vcmp.eq.f32.partialorder %v160_v24, 8.507059e+37  ;;  %v163_v40 = vor.u32 1.1754944e-38, %v162_v25  ;;  %795 = vrcp.f32 %v954_v26  ;;  %v178_v43 = vor.u32 1.1754944e-38, %v177_v28 }
  0x12   :  { %v788_v37 = vpop.eup %787  ;;  %v122_v38 = vmul.f32 %v786_v32, %v89_v11  ;;  %vm127_vm8 = vweird.f32 %v786_v32  ;;  %vm984_vm11 = vcmp.eq.f32.partialorder %v175_v31, 8.507059e+37  ;;  %v193_v47 = vor.u32 1.1754944e-38, %v192_v36 }
  0x13   :  { %v790_v41 = vpop.eup %789  ;;  %v137_v42 = vmul.f32 %v788_v37, %v932_v12  ;;  %vm142_vm10 = vweird.f32 %v788_v37  ;;  %vm988_vm13 = vcmp.eq.f32.partialorder %v190_v35, 8.507059e+37  ;;  %v205_v51 = vand.u32 2147483647, %v954_v26  ;;  %vm1000_vm14 = vmor %vm126_vm0, %vm127_vm8 }
  0x14   :  { %v123_v44 = vsub.f32 1.0, %v122_v38  ;;  %v152_v45 = vmul.f32 %v790_v41, %v935_v13  ;;  %v792_v48 = vpop.eup %791  ;;  %vm157_vm12 = vweird.f32 %v790_v41  ;;  %v207_v52 = vand.u32 2147483648, %v954_v26  ;;  %vm1011_vm9 = vmor %vm141_vm1, %vm142_vm10 }
  0x15   :  { %v138_v49 = vsub.f32 1.0, %v137_v42  ;;  %v794_v53 = vpop.eup %793  ;;  %v167_v56 = vmul.f32 %v792_v48, %v940_v16  ;;  %v996_v57 = vadd.f32 1.0, %v949_v23  ;;  %vm172_vm15 = vweird.f32 %v792_v48  ;;  %vm1018_vm8 = vmor %vm156_vm3, %vm157_vm12 }
  0x16   :  { %v124_v54 = vmul.f32 %v786_v32, %v123_v44  ;;  %v153_v55 = vsub.f32 1.0, %v152_v45  ;;  %v182_v60 = vmul.f32 %v794_v53, %v944_v20  ;;  %v1006_v61 = vadd.f32 1.0, %v956_v27  ;;  %vm1033_vm1 = vmor %vm171_vm5, %vm172_vm15  ;;  %v33_v45 = vld [vmem:[#allocation2 + $0x40] sm:$0xff] }
  0x17   :  { %v139_v59 = vmul.f32 %v788_v37, %v138_v49  ;;  %v796_v62 = vpop.eup %795  ;;  %v168_v2 = vsub.f32 1.0, %v167_v56  ;;  %vm187_vm0 = vweird.f32 %v794_v53  ;;  %797 = vrcp.f32 %v996_v57 }
  0x18   :  { %v125_v63 = vadd.f32 %v786_v32, %v124_v54  ;;  %v154_v1 = vmul.f32 %v790_v41, %v153_v55  ;;  %v183_v8 = vsub.f32 1.0, %v182_v60  ;;  %v197_v11 = vmul.f32 %v796_v62, %v954_v26 }
  0x19   :  { %v140_v5 = vadd.f32 %v788_v37, %v139_v59  ;;  %vm202_vm7 = vweird.f32 %v796_v62  ;;  %v169_v17 = vmul.f32 %v792_v48, %v168_v2  ;;  %v220_v44 = vand.u32 2147483647, %v996_v57 }
  0x1a   :  { %v129_v12 = vsel %vm1000_vm14, %v786_v32, %v125_v63  ;;  %v155_v15 = vadd.f32 %v790_v41, %v154_v1  ;;  %v184_v21 = vmul.f32 %v794_v53, %v183_v8  ;;  %v198_v22 = vsub.f32 1.0, %v197_v11 }
  0x1b   :  { %v134_v18 = vsel %vm961_vm2, %v133_v30, %v129_v12  ;;  %v144_v13 = vsel %vm1011_vm9, %v788_v37, %v140_v5  ;;  %v170_v29 = vadd.f32 %v792_v48, %v169_v17  ;;  %vm1697_vm2 = vweird.f32 %v944_v20  ;;  %v37_v5 = vld [vmem:[#allocation2 + $0x60] sm:$0xff] }
  0x1c   :  { %v135_v24 = vmul.f32 %v134_v18, %v920_v3  ;;  %v149_v25 = vsel %vm968_vm4, %v148_v34, %v144_v13  ;;  %v159_v28 = vsel %vm1018_vm8, %v790_v41, %v155_v15  ;;  %vm1045_vm3 = vmor %vm1697_vm2, %vm187_vm0  ;;  %v185_v3 = vadd.f32 %v794_v53, %v184_v21 }
  0x1d   :  { %v150_v30 = vmul.f32 %v149_v25, %v922_v4  ;;  %v164_v31 = vsel %vm975_vm6, %v163_v40, %v159_v28  ;;  %v199_v32 = vmul.f32 %v796_v62, %v198_v22  ;;  %v174_v34 = vsel %vm1033_vm1, %v792_v48, %v170_v29  ;;  %v798_v39 = vpop.eup %797  ;;  %v35_v48 = vld [vmem:[#allocation2 + $0x50] sm:$0xff] }
  0x1e   :  { %v165_v33 = vmul.f32 %v164_v31, %v924_v6  ;;  %vm1700_vm4 = vweird.f32 %v954_v26  ;;  %vm1062_vm9 = vcmp.eq.f32.partialorder %v205_v51, 8.507059e+37  ;;  %v208_v4 = vor.u32 1.1754944e-38, %v207_v52 }
  0x1f   :  { %vm1058_vm5 = vmor %vm1700_vm4, %vm202_vm7  ;;  %v687_v36 = vpack.c.bf16 %v150_v30, %v135_v24  ;;  %v179_v37 = vsel %vm984_vm11, %v178_v43, %v174_v34  ;;  %v189_v6 = vsel %vm1045_vm3, %v794_v53, %v185_v3  ;;  %v200_v38 = vadd.f32 %v796_v62, %v199_v32 }
  0x20   :  { %v180_v26 = vmul.f32 %v179_v37, %v926_v9  ;;  %v194_v40 = vsel %vm988_vm13, %v193_v47, %v189_v6  ;;  %vm216_vm6 = vweird.f32 %v996_v57  ;;  %v212_v43 = vmul.f32 %v798_v39, %v996_v57 }
  0x21   :  { %688 = vst [vmem:[#allocation5] sm:$0xff] %v687_v36   ;;  %v195_v41 = vmul.f32 %v194_v40, %v928_v10  ;;  %v204_v42 = vsel %vm1058_vm5, %v796_v62, %v200_v38  ;;  %v222_v47 = vand.u32 2147483648, %v996_v57  ;;  %799 = vrcp.f32 %v1006_v61 }
  0x22   :  { %v692_v49 = vpack.c.bf16 %v180_v26, %v165_v33  ;;  %v209_v9 = vsel %vm1062_vm9, %v208_v4, %v204_v42  ;;  %v213_v51 = vsub.f32 1.0, %v212_v43  ;;  %vm217_vm7 = vweird.f32 %v798_v39 }
  0x23   :  { %v210_v10 = vmul.f32 %v209_v9, %v937_v14  ;;  %v235_v52 = vand.u32 2147483647, %v1006_v61  ;;  %v1085_v53 = vmul.f32 %v33_v45, %v33_v45  ;;  %v1087_v54 = vmul.f32 %v34_v46, %v34_v46  ;;  %vm1095_vm10 = vmor %vm216_vm6, %vm217_vm7 }
  0x24   :  { %764 = vst [vmem:[#allocation5 + $0x8] sm:$0xff] %v692_v49   ;;  %v1089_v55 = vmul.f32 %v35_v48, %v35_v48  ;;  %v214_v58 = vmul.f32 %v798_v39, %v213_v51  ;;  %v1091_v59 = vmul.f32 %v36_v50, %v36_v50  ;;  %vm1099_vm11 = vcmp.eq.f32.partialorder %v220_v44, 8.507059e+37 }
  0x25   :  { %v697_v56 = vpack.c.bf16 %v210_v10, %v195_v41  ;;  %v237_v62 = vand.u32 2147483648, %v1006_v61  ;;  %v1105_v63 = vadd.f32 1.0, %v1085_v53  ;;  %v1108_v0 = vadd.f32 1.0, %v1087_v54 }
  0x26   :  { %v215_v1 = vadd.f32 %v798_v39, %v214_v58  ;;  %v223_v2 = vor.u32 1.1754944e-38, %v222_v47  ;;  %vm231_vm12 = vweird.f32 %v1006_v61  ;;  %vm1111_vm13 = vcmp.eq.f32.partialorder %v235_v52, 8.507059e+37 }
  0x27   :  { %765 = vst [vmem:[#allocation5 + $0x10] sm:$0xff] %v697_v56   ;;  %v800_v8 = vpop.eup %799  ;;  %801 = vrcp.f32 %v1105_v63  ;;  %v252_v11 = vand.u32 2147483648, %v1105_v63  ;;  %v1118_v12 = vadd.f32 1.0, %v1089_v55  ;;  %v1121_v15 = vadd.f32 1.0, %v1091_v59 }
  0x28   :  { %v219_v17 = vsel %vm1095_vm10, %v798_v39, %v215_v1  ;;  %v227_v18 = vmul.f32 %v800_v8, %v1006_v61  ;;  %v250_v13 = vand.u32 2147483647, %v1105_v63  ;;  %803 = vrcp.f32 %v1108_v0 }
  0x29   :  { %vm232_vm14 = vweird.f32 %v800_v8  ;;  %v238_v19 = vor.u32 1.1754944e-38, %v237_v62  ;;  %v1128_v21 = vmul.f32 %v37_v5, %v37_v5  ;;  %v1130_v22 = vmul.f32 %v38_v7, %v38_v7 }
  0x2a   :  { %v224_v24 = vsel %vm1099_vm11, %v223_v2, %v219_v17  ;;  %v228_v25 = vsub.f32 1.0, %v227_v18  ;;  %v265_v28 = vand.u32 2147483647, %v1108_v0  ;;  %v267_v29 = vand.u32 2147483648, %v1108_v0  ;;  %vm1150_vm1 = vmor %vm231_vm12, %vm232_vm14  ;;  %v45_v18 = vld [vmem:[#allocation2 + $0xa0] sm:$0xff] }
  0x2b   :  { %vm246_vm15 = vweird.f32 %v1105_v63  ;;  %v253_v16 = vor.u32 1.1754944e-38, %v252_v11  ;;  %805 = vrcp.f32 %v1118_v12  ;;  %v282_v30 = vand.u32 2147483648, %v1118_v12 }
  0x2c   :  { %v229_v31 = vmul.f32 %v800_v8, %v228_v25  ;;  %vm1139_vm0 = vcmp.eq.f32.partialorder %v250_v13, 8.507059e+37  ;;  %vm261_vm8 = vweird.f32 %v1108_v0  ;;  %v280_v32 = vand.u32 2147483647, %v1118_v12  ;;  %v39_v13 = vld [vmem:[#allocation2 + $0x70] sm:$0xff] }
  0x2d   :  { %807 = vrcp.f32 %v1121_v15  ;;  %v802_v33 = vpop.eup %801  ;;  %v225_v34 = vmul.f32 %v224_v24, %v949_v23  ;;  %vm1154_vm2 = vcmp.eq.f32.partialorder %v265_v28, 8.507059e+37  ;;  %v268_v4 = vor.u32 1.1754944e-38, %v267_v29  ;;  %v40_v29 = vld [vmem:[#allocation2 + $0x78] sm:$0xff] }
  0x2e   :  { %vm276_vm3 = vweird.f32 %v1118_v12  ;;  %v804_v36 = vpop.eup %803  ;;  %v230_v37 = vadd.f32 %v800_v8, %v229_v31  ;;  %v242_v6 = vmul.f32 %v802_v33, %v1105_v63  ;;  %v1160_v38 = vor.u32 1.1754944e-38, %v282_v30 }
  0x2f   :  { %v295_v23 = vand.u32 2147483647, %v1121_v15  ;;  %vm247_vm4 = vweird.f32 %v802_v33  ;;  %v257_v61 = vmul.f32 %v804_v36, %v1108_v0  ;;  %vm291_vm5 = vweird.f32 %v1121_v15 }
  0x30   :  { %v1166_v39 = vadd.f32 1.0, %v1128_v21  ;;  %v234_v26 = vsel %vm1150_vm1, %v800_v8, %v230_v37  ;;  %v243_v40 = vsub.f32 1.0, %v242_v6  ;;  %vm262_vm9 = vweird.f32 %v804_v36  ;;  %vm1190_vm10 = vmor %vm246_vm15, %vm247_vm4  ;;  %v41_v6 = vld [vmem:[#allocation2 + $0x80] sm:$0xff] }
  0x31   :  { %vm1170_vm6 = vcmp.eq.f32.partialorder %v280_v32, 8.507059e+37  ;;  %v297_v42 = vand.u32 2147483648, %v1121_v15  ;;  %v806_v43 = vpop.eup %805  ;;  %v239_v44 = vsel %vm1111_vm13, %v238_v19, %v234_v26  ;;  %v258_v45 = vsub.f32 1.0, %v257_v61  ;;  %vm1199_vm12 = vmor %vm261_vm8, %vm262_vm9 }
  0x32   :  { %v1178_v46 = vadd.f32 1.0, %v1130_v22  ;;  %809 = vrcp.f32 %v1166_v39  ;;  %v240_v49 = vmul.f32 %v239_v44, %v956_v27  ;;  %v244_v9 = vmul.f32 %v802_v33, %v243_v40 }
  0x33   :  { %v808_v48 = vpop.eup %807  ;;  %v272_v47 = vmul.f32 %v806_v43, %v1118_v12  ;;  %vm1183_vm7 = vcmp.eq.f32.partialorder %v295_v23, 8.507059e+37  ;;  %v259_v51 = vmul.f32 %v804_v36, %v258_v45  ;;  %vm277_vm11 = vweird.f32 %v806_v43 }
  0x34   :  { %v287_v52 = vmul.f32 %v808_v48, %v1121_v15  ;;  %v310_v27 = vand.u32 2147483647, %v1166_v39  ;;  %v702_v56 = vpack.c.bf16 %v240_v49, %v225_v34  ;;  %v245_v58 = vadd.f32 %v802_v33, %v244_v9  ;;  %vm1215_vm15 = vmor %vm276_vm3, %vm277_vm11 }
  0x35   :  { %v273_v14 = vsub.f32 1.0, %v272_v47  ;;  %vm292_vm13 = vweird.f32 %v808_v48  ;;  %v260_v62 = vadd.f32 %v804_v36, %v259_v51  ;;  %v312_v1 = vand.u32 2147483648, %v1166_v39 }
  0x36   :  { %v288_v63 = vsub.f32 1.0, %v287_v52  ;;  %811 = vrcp.f32 %v1178_v46  ;;  %766 = vst [vmem:[#allocation5 + $0x18] sm:$0xff] %v702_v56   ;;  %v249_v2 = vsel %vm1190_vm10, %v802_v33, %v245_v58  ;;  %v298_v5 = vor.u32 1.1754944e-38, %v297_v42 }
  0x37   :  { %v274_v57 = vmul.f32 %v806_v43, %v273_v14  ;;  %vm306_vm14 = vweird.f32 %v1166_v39  ;;  %v254_v7 = vsel %vm1139_vm0, %v253_v16, %v249_v2  ;;  %v264_v8 = vsel %vm1199_vm12, %v804_v36, %v260_v62  ;;  %vm1229_vm0 = vmor %vm291_vm5, %vm292_vm13 }
  0x38   :  { %v810_v0 = vpop.eup %809  ;;  %v289_v17 = vmul.f32 %v808_v48, %v288_v63  ;;  %vm1219_vm8 = vcmp.eq.f32.partialorder %v310_v27, 8.507059e+37  ;;  %v255_v19 = vmul.f32 %v254_v7, %v1085_v53  ;;  %v269_v24 = vsel %vm1154_vm2, %v268_v4, %v264_v8  ;;  %v43_v27 = vld [vmem:[#allocation2 + $0x90] sm:$0xff] }
  0x39   :  { %v275_v25 = vadd.f32 %v806_v43, %v274_v57  ;;  %v302_v28 = vmul.f32 %v810_v0, %v1166_v39  ;;  %v270_v16 = vmul.f32 %v269_v24, %v1087_v54  ;;  %v313_v31 = vor.u32 1.1754944e-38, %v312_v1  ;;  %v52_v24 = vld [vmem:[#allocation2 + $0xd8] sm:$0xff] }
  0x3a   :  { %v290_v30 = vadd.f32 %v808_v48, %v289_v17  ;;  %vm321_vm1 = vweird.f32 %v1178_v46  ;;  %vm307_vm2 = vweird.f32 %v810_v0  ;;  %v1238_v32 = vmul.f32 %v39_v13, %v39_v13 }
  0x3b   :  { %v279_v53 = vsel %vm1215_vm15, %v806_v43, %v275_v25  ;;  %v303_v3 = vsub.f32 1.0, %v302_v28  ;;  %v707_v33 = vpack.c.bf16 %v270_v16, %v255_v19  ;;  %v1245_v20 = vmul.f32 %v40_v29, %v40_v29  ;;  %vm1254_vm3 = vmor %vm306_vm14, %vm307_vm2  ;;  %v46_v16 = vld [vmem:[#allocation2 + $0xa8] sm:$0xff] }
  0x3c   :  { %v812_v15 = vpop.eup %811  ;;  %v284_v34 = vsel %vm1170_vm6, %v1160_v38, %v279_v53  ;;  %v294_v54 = vsel %vm1229_vm0, %v808_v48, %v290_v30  ;;  %v325_v61 = vand.u32 2147483647, %v1178_v46  ;;  %v103_v26 = vadd.f32 1.0, %v1238_v32  ;;  %v42_v48 = vld [vmem:[#allocation2 + $0x88] sm:$0xff] }
  0x3d   :  { %v285_v35 = vmul.f32 %v284_v34, %v1089_v55  ;;  %v299_v4 = vsel %vm1183_vm7, %v298_v5, %v294_v54  ;;  %v304_v36 = vmul.f32 %v810_v0, %v303_v3  ;;  %v317_v37 = vmul.f32 %v812_v15, %v1178_v46  ;;  %767 = vst [vmem:[#allocation5 + $0x20] sm:$0xff] %v707_v33  }
  0x3e   :  { %v300_v23 = vmul.f32 %v299_v4, %v1091_v59  ;;  %v327_v55 = vand.u32 2147483648, %v1178_v46  ;;  %vm322_vm4 = vweird.f32 %v812_v15  ;;  %v104_v42 = vadd.f32 1.0, %v1245_v20 }
  0x3f   :  { %v305_v40 = vadd.f32 %v810_v0, %v304_v36  ;;  %v318_v41 = vsub.f32 1.0, %v317_v37  ;;  %813 = vrcp.f32 %v103_v26  ;;  %v1262_v59 = vmul.f32 %v41_v6, %v41_v6  ;;  %vm1270_vm5 = vmor %vm321_vm1, %vm322_vm4 }
  0x40   :  { %v712_v43 = vpack.c.bf16 %v300_v23, %v285_v35  ;;  %v340_v45 = vand.u32 2147483647, %v103_v26  ;;  %815 = vrcp.f32 %v104_v42  ;;  %v328_v47 = vor.u32 1.1754944e-38, %v327_v55 }
  0x41   :  { %v309_v39 = vsel %vm1254_vm3, %v810_v0, %v305_v40  ;;  %v319_v44 = vmul.f32 %v812_v15, %v318_v41  ;;  %vm326_vm9 = vcmp.eq.f32.partialorder %v325_v61, 8.507059e+37  ;;  %v342_v10 = vand.u32 2147483648, %v103_v26  ;;  %v44_v0 = vld [vmem:[#allocation2 + $0x98] sm:$0xff] }
  0x42   :  { %768 = vst [vmem:[#allocation5 + $0x28] sm:$0xff] %v712_v43   ;;  %v314_v49 = vsel %vm1219_vm8, %v313_v31, %v309_v39  ;;  %vm336_vm6 = vweird.f32 %v103_v26  ;;  %v1274_v51 = vmul.f32 %v42_v48, %v42_v48  ;;  %v1277_v52 = vadd.f32 1.0, %v1262_v59 }
  0x43   :  { %v320_v50 = vadd.f32 %v812_v15, %v319_v44  ;;  %v315_v56 = vmul.f32 %v314_v49, %v1128_v21  ;;  %vm1282_vm7 = vcmp.eq.f32.partialorder %v340_v45, 8.507059e+37  ;;  %vm351_vm10 = vweird.f32 %v104_v42 }
  0x44   :  { %v355_v60 = vand.u32 2147483647, %v104_v42  ;;  %v357_v63 = vand.u32 2147483648, %v104_v42  ;;  %v1287_v1 = vadd.f32 1.0, %v1274_v51  ;;  %817 = vrcp.f32 %v1277_v52 }
  0x45   :  { %v324_v46 = vsel %vm1270_vm5, %v812_v15, %v320_v50  ;;  %v814_v14 = vpop.eup %813  ;;  %v343_v5 = vor.u32 1.1754944e-38, %v342_v10  ;;  %v1291_v7 = vmul.f32 %v43_v27, %v43_v27  ;;  %v370_v11 = vand.u32 2147483647, %v1277_v52 }
  0x46   :  { %v329_v62 = vsel %vm326_vm9, %v328_v47, %v324_v46  ;;  %v816_v2 = vpop.eup %815  ;;  %v332_v57 = vmul.f32 %v814_v14, %v103_v26  ;;  %v372_v17 = vand.u32 2147483648, %v1277_v52  ;;  %819 = vrcp.f32 %v1287_v1 }
  0x47   :  { %v330_v21 = vmul.f32 %v329_v62, %v1130_v22  ;;  %v347_v8 = vmul.f32 %v816_v2, %v104_v42  ;;  %vm337_vm11 = vweird.f32 %v814_v14  ;;  %vm1296_vm12 = vcmp.eq.f32.partialorder %v355_v60, 8.507059e+37 }
  0x48   :  { %v333_v19 = vsub.f32 1.0, %v332_v57  ;;  %vm352_vm13 = vweird.f32 %v816_v2  ;;  %v358_v25 = vor.u32 1.1754944e-38, %v357_v63  ;;  %v1300_v12 = vmul.f32 %v44_v0, %v44_v0  ;;  %vm1309_vm15 = vmor %vm336_vm6, %vm337_vm11  ;;  %v47_v0 = vld [vmem:[#allocation2 + $0xb0] sm:$0xff] }
  0x49   :  { %v717_v13 = vpack.c.bf16 %v330_v21, %v315_v56  ;;  %v348_v22 = vsub.f32 1.0, %v347_v8  ;;  %vm366_vm14 = vweird.f32 %v1277_v52  ;;  %v1304_v29 = vadd.f32 1.0, %v1291_v7  ;;  %vm1320_vm1 = vmor %vm351_vm10, %vm352_vm13 }
  0x4a   :  { %v334_v28 = vmul.f32 %v814_v14, %v333_v19  ;;  %v1306_v30 = vmul.f32 %v45_v18, %v45_v18  ;;  %v818_v31 = vpop.eup %817  ;;  %vm1313_vm8 = vcmp.eq.f32.partialorder %v370_v11, 8.507059e+37  ;;  %v373_v33 = vor.u32 1.1754944e-38, %v372_v17  ;;  %v48_v19 = vld [vmem:[#allocation2 + $0xb8] sm:$0xff] }
  0x4b   :  { %769 = vst [vmem:[#allocation5 + $0x30] sm:$0xff] %v717_v13   ;;  %v349_v3 = vmul.f32 %v816_v2, %v348_v22  ;;  %vm381_vm0 = vweird.f32 %v1287_v1  ;;  %v362_v35 = vmul.f32 %v818_v31, %v1277_v52  ;;  %v385_v4 = vand.u32 2147483647, %v1287_v1 }
  0x4c   :  { %v335_v34 = vadd.f32 %v814_v14, %v334_v28  ;;  %821 = vrcp.f32 %v1304_v29  ;;  %v820_v36 = vpop.eup %819  ;;  %v387_v6 = vand.u32 2147483648, %v1287_v1  ;;  %v1329_v23 = vadd.f32 1.0, %v1300_v12 }
  0x4d   :  { %v350_v37 = vadd.f32 %v816_v2, %v349_v3  ;;  %v1331_v38 = vmul.f32 %v46_v16, %v46_v16  ;;  %v363_v55 = vsub.f32 1.0, %v362_v35  ;;  %vm367_vm2 = vweird.f32 %v818_v31 }
  0x4e   :  { %v339_v61 = vsel %vm1309_vm15, %v814_v14, %v335_v34  ;;  %v377_v26 = vmul.f32 %v820_v36, %v1287_v1  ;;  %vm382_vm3 = vweird.f32 %v820_v36  ;;  %v1341_v42 = vadd.f32 1.0, %v1306_v30  ;;  %vm1349_vm4 = vmor %vm366_vm14, %vm367_vm2 }
  0x4f   :  { %v344_v40 = vsel %vm1282_vm7, %v343_v5, %v339_v61  ;;  %v354_v41 = vsel %vm1320_vm1, %v816_v2, %v350_v37  ;;  %v364_v44 = vmul.f32 %v818_v31, %v363_v55  ;;  %vm1353_vm5 = vcmp.eq.f32.partialorder %v385_v4, 8.507059e+37  ;;  %vm1365_vm9 = vmor %vm381_vm0, %vm382_vm3 }
  0x50   :  { %v345_v43 = vmul.f32 %v344_v40, %v1238_v32  ;;  %v359_v39 = vsel %vm1296_vm12, %v358_v25, %v354_v41  ;;  %v378_v45 = vsub.f32 1.0, %v377_v26  ;;  %v388_v47 = vor.u32 1.1754944e-38, %v387_v6  ;;  %v49_v6 = vld [vmem:[#allocation2 + $0xc0] sm:$0xff] }
  0x51   :  { %v360_v48 = vmul.f32 %v359_v39, %v1245_v20  ;;  %823 = vrcp.f32 %v1329_v23  ;;  %v365_v50 = vadd.f32 %v818_v31, %v364_v44  ;;  %v400_v27 = vand.u32 2147483647, %v1304_v29 }
  0x52   :  { %v822_v32 = vpop.eup %821  ;;  %v379_v10 = vmul.f32 %v820_v36, %v378_v45  ;;  %v1360_v20 = vadd.f32 1.0, %v1331_v38  ;;  %vm396_vm6 = vweird.f32 %v1304_v29  ;;  %v402_v58 = vand.u32 2147483648, %v1304_v29 }
  0x53   :  { %v722_v52 = vpack.c.bf16 %v360_v48, %v345_v43  ;;  %v392_v46 = vmul.f32 %v822_v32, %v1304_v29  ;;  %v369_v60 = vsel %vm1349_vm4, %v818_v31, %v365_v50  ;;  %v415_v62 = vand.u32 2147483647, %v1329_v23 }
  0x54   :  { %v380_v14 = vadd.f32 %v820_v36, %v379_v10  ;;  %825 = vrcp.f32 %v1341_v42  ;;  %v374_v63 = vsel %vm1313_vm8, %v373_v33, %v369_v60  ;;  %vm397_vm7 = vweird.f32 %v822_v32 }
  0x55   :  { %770 = vst [vmem:[#allocation5 + $0x38] sm:$0xff] %v722_v52   ;;  %v393_v1 = vsub.f32 1.0, %v392_v46  ;;  %v417_v2 = vand.u32 2147483648, %v1329_v23  ;;  %v375_v21 = vmul.f32 %v374_v63, %v1262_v59  ;;  %vm1382_vm10 = vcmp.eq.f32.partialorder %v400_v27, 8.507059e+37  ;;  %vm1393_vm11 = vmor %vm396_vm6, %vm397_vm7 }
  0x56   :  { %v384_v57 = vsel %vm1365_vm9, %v820_v36, %v380_v14  ;;  %827 = vrcp.f32 %v1360_v20  ;;  %v403_v18 = vor.u32 1.1754944e-38, %v402_v58  ;;  %v430_v13 = vand.u32 2147483647, %v1341_v42 }
  0x57   :  { %v824_v8 = vpop.eup %823  ;;  %v389_v11 = vsel %vm1353_vm5, %v388_v47, %v384_v57  ;;  %v394_v17 = vmul.f32 %v822_v32, %v393_v1  ;;  %vm411_vm12 = vweird.f32 %v1329_v23  ;;  %vm1399_vm13 = vcmp.eq.f32.partialorder %v415_v62, 8.507059e+37 }
  0x58   :  { %v390_v59 = vmul.f32 %v389_v11, %v1274_v51  ;;  %v407_v22 = vmul.f32 %v824_v8, %v1329_v23  ;;  %v418_v16 = vor.u32 1.1754944e-38, %v417_v2  ;;  %vm426_vm14 = vweird.f32 %v1341_v42 }
  0x59   :  { %v395_v28 = vadd.f32 %v822_v32, %v394_v17  ;;  %v1404_v31 = vmul.f32 %v47_v0, %v47_v0  ;;  %vm412_vm15 = vweird.f32 %v824_v8  ;;  %v1406_v3 = vmul.f32 %v48_v19, %v48_v19 }
  0x5a   :  { %v826_v51 = vpop.eup %825  ;;  %v727_v29 = vpack.c.bf16 %v390_v59, %v375_v21  ;;  %v408_v53 = vsub.f32 1.0, %v407_v22  ;;  %vm1411_vm8 = vcmp.eq.f32.partialorder %v430_v13, 8.507059e+37  ;;  %v432_v54 = vand.u32 2147483648, %v1341_v42  ;;  %vm1425_vm1 = vmor %vm411_vm12, %vm412_vm15 }
  0x5b   :  { %v399_v15 = vsel %vm1393_vm11, %v822_v32, %v395_v28  ;;  %v422_v33 = vmul.f32 %v826_v51, %v1341_v42  ;;  %vm441_vm0 = vweird.f32 %v1360_v20  ;;  %v445_v36 = vand.u32 2147483647, %v1360_v20  ;;  %v50_v32 = vld [vmem:[#allocation2 + $0xc8] sm:$0xff] }
  0x5c   :  { %v828_v35 = vpop.eup %827  ;;  %771 = vst [vmem:[#allocation5 + $0x40] sm:$0xff] %v727_v29   ;;  %v409_v4 = vmul.f32 %v824_v8, %v408_v53  ;;  %v1419_v37 = vadd.f32 1.0, %v1404_v31  ;;  %v404_v61 = vsel %vm1382_vm10, %v403_v18, %v399_v15  ;;  %vm427_vm2 = vweird.f32 %v826_v51 }
  0x5d   :  { %v423_v26 = vsub.f32 1.0, %v422_v33  ;;  %v437_v40 = vmul.f32 %v828_v35, %v1360_v20  ;;  %v447_v43 = vand.u32 2147483648, %v1360_v20  ;;  %v1432_v39 = vadd.f32 1.0, %v1406_v3  ;;  %vm1442_vm4 = vmor %vm426_vm14, %vm427_vm2 }
  0x5e   :  { %v410_v41 = vadd.f32 %v824_v8, %v409_v4  ;;  %829 = vrcp.f32 %v1419_v37  ;;  %vm442_vm3 = vweird.f32 %v828_v35  ;;  %v1435_v23 = vmul.f32 %v49_v6, %v49_v6 }
  0x5f   :  { %v424_v44 = vmul.f32 %v826_v51, %v423_v26  ;;  %v438_v45 = vsub.f32 1.0, %v437_v40  ;;  %v405_v48 = vmul.f32 %v404_v61, %v1291_v7  ;;  %v433_v47 = vor.u32 1.1754944e-38, %v432_v54  ;;  %vm1456_vm9 = vmor %vm441_vm0, %vm442_vm3 }
  0x60   :  { %v414_v49 = vsel %vm1425_vm1, %v824_v8, %v410_v41  ;;  %831 = vrcp.f32 %v1432_v39  ;;  %vm1449_vm5 = vcmp.eq.f32.partialorder %v445_v36, 8.507059e+37  ;;  %v448_v56 = vor.u32 1.1754944e-38, %v447_v43  ;;  %v54_v43 = vld [vmem:[#allocation2 + $0xe8] sm:$0xff] }
  0x61   :  { %v419_v50 = vsel %vm1399_vm13, %v418_v16, %v414_v49  ;;  %v425_v10 = vadd.f32 %v826_v51, %v424_v44  ;;  %v439_v27 = vmul.f32 %v828_v35, %v438_v45  ;;  %vm456_vm6 = vweird.f32 %v1419_v37 }
  0x62   :  { %v420_v52 = vmul.f32 %v419_v50, %v1300_v12  ;;  %v460_v46 = vand.u32 2147483647, %v1419_v37  ;;  %v1464_v14 = vmul.f32 %v50_v32, %v50_v32  ;;  %v1467_v62 = vadd.f32 1.0, %v1435_v23  ;;  %v51_v12 = vld [vmem:[#allocation2 + $0xd0] sm:$0xff] }
  0x63   :  { %v429_v58 = vsel %vm1442_vm4, %v826_v51, %v425_v10  ;;  %v440_v60 = vadd.f32 %v828_v35, %v439_v27  ;;  %v462_v2 = vand.u32 2147483648, %v1419_v37  ;;  %v475_v21 = vand.u32 2147483647, %v1432_v39 }
  0x64   :  { %v830_v20 = vpop.eup %829  ;;  %v732_v63 = vpack.c.bf16 %v420_v52, %v405_v48  ;;  %v434_v1 = vsel %vm1411_vm8, %v433_v47, %v429_v58  ;;  %v477_v8 = vand.u32 2147483648, %v1432_v39  ;;  %v1481_v18 = vadd.f32 1.0, %v1464_v14 }
  0x65   :  { %v435_v57 = vmul.f32 %v434_v1, %v1306_v30  ;;  %v444_v5 = vsel %vm1456_vm9, %v828_v35, %v440_v60  ;;  %v452_v0 = vmul.f32 %v830_v20, %v1419_v37  ;;  %833 = vrcp.f32 %v1467_v62  ;;  %v53_v35 = vld [vmem:[#allocation2 + $0xe0] sm:$0xff] }
  0x66   :  { %v832_v11 = vpop.eup %831  ;;  %772 = vst [vmem:[#allocation5 + $0x48] sm:$0xff] %v732_v63   ;;  %v449_v17 = vsel %vm1449_vm5, %v448_v56, %v444_v5  ;;  %v1484_v13 = vmul.f32 %v51_v12, %v51_v12  ;;  %vm457_vm7 = vweird.f32 %v830_v20  ;;  %vm1488_vm10 = vcmp.eq.f32.partialorder %v460_v46, 8.507059e+37  ;;  %v55_v12 = vld [vmem:[#allocation2 + $0xf0] sm:$0xff] }
  0x67   :  { %v450_v30 = vmul.f32 %v449_v17, %v1331_v38  ;;  %v453_v19 = vsub.f32 1.0, %v452_v0  ;;  %v467_v59 = vmul.f32 %v832_v11, %v1432_v39  ;;  %vm471_vm11 = vweird.f32 %v1432_v39  ;;  %vm1496_vm13 = vmor %vm456_vm6, %vm457_vm7 }
  0x68   :  { %835 = vrcp.f32 %v1481_v18  ;;  %vm472_vm12 = vweird.f32 %v832_v11  ;;  %v463_v51 = vor.u32 1.1754944e-38, %v462_v2  ;;  %vm1500_vm14 = vcmp.eq.f32.partialorder %v475_v21, 8.507059e+37 }
  0x69   :  { %v737_v25 = vpack.c.bf16 %v450_v30, %v435_v57  ;;  %v454_v28 = vmul.f32 %v830_v20, %v453_v19  ;;  %v468_v16 = vsub.f32 1.0, %v467_v59  ;;  %v478_v53 = vor.u32 1.1754944e-38, %v477_v8  ;;  %vm1512_vm8 = vmor %vm471_vm11, %vm472_vm12 }
  0x6a   :  { %v1504_v15 = vmul.f32 %v52_v24, %v52_v24  ;;  %vm486_vm15 = vweird.f32 %v1467_v62  ;;  %v1508_v54 = vadd.f32 1.0, %v1484_v13  ;;  %v490_v37 = vand.u32 2147483647, %v1467_v62 }
  0x6b   :  { %773 = vst [vmem:[#allocation5 + $0x50] sm:$0xff] %v737_v25   ;;  %v455_v33 = vadd.f32 %v830_v20, %v454_v28  ;;  %v469_v34 = vmul.f32 %v832_v11, %v468_v16  ;;  %v834_v4 = vpop.eup %833  ;;  %v492_v6 = vand.u32 2147483648, %v1467_v62  ;;  %vm501_vm0 = vweird.f32 %v1481_v18  ;;  %v56_v16 = vld [vmem:[#allocation2 + $0xf8] sm:$0xff] }
  0x6c   :  { %v505_v61 = vand.u32 2147483647, %v1481_v18  ;;  %v482_v40 = vmul.f32 %v834_v4, %v1467_v62  ;;  %v1524_v41 = vadd.f32 1.0, %v1504_v15  ;;  %vm487_vm1 = vweird.f32 %v834_v4 }
  0x6d   :  { %v459_v55 = vsel %vm1496_vm13, %v830_v20, %v455_v33  ;;  %v470_v26 = vadd.f32 %v832_v11, %v469_v34  ;;  %837 = vrcp.f32 %v1508_v54  ;;  %v1529_v45 = vmul.f32 %v53_v35, %v53_v35  ;;  %vm1545_vm3 = vmor %vm486_vm15, %vm487_vm1 }
  0x6e   :  { %v836_v39 = vpop.eup %835  ;;  %v464_v44 = vsel %vm1488_vm10, %v463_v51, %v459_v55  ;;  %v483_v9 = vsub.f32 1.0, %v482_v40  ;;  %v507_v50 = vand.u32 2147483648, %v1481_v18  ;;  %v1538_v10 = vmul.f32 %v54_v43, %v54_v43 }
  0x6f   :  { %v465_v48 = vmul.f32 %v464_v44, %v1404_v31  ;;  %v474_v49 = vsel %vm1512_vm8, %v832_v11, %v470_v26  ;;  %v497_v47 = vmul.f32 %v836_v39, %v1481_v18  ;;  %vm502_vm2 = vweird.f32 %v836_v39 }
  0x70   :  { %v479_v32 = vsel %vm1500_vm14, %v478_v53, %v474_v49  ;;  %v484_v7 = vmul.f32 %v834_v4, %v483_v9  ;;  %839 = vrcp.f32 %v1524_v41  ;;  %vm1549_vm4 = vcmp.eq.f32.partialorder %v490_v37, 8.507059e+37  ;;  %vm1559_vm5 = vmor %vm501_vm0, %vm502_vm2 }
  0x71   :  { %v480_v27 = vmul.f32 %v479_v32, %v1406_v3  ;;  %v498_v52 = vsub.f32 1.0, %v497_v47  ;;  %v493_v56 = vor.u32 1.1754944e-38, %v492_v6  ;;  %v1554_v3 = vadd.f32 1.0, %v1529_v45 }
  0x72   :  { %v485_v58 = vadd.f32 %v834_v4, %v484_v7  ;;  %vm1563_vm9 = vcmp.eq.f32.partialorder %v505_v61, 8.507059e+37  ;;  %v508_v1 = vor.u32 1.1754944e-38, %v507_v50  ;;  %vm516_vm6 = vweird.f32 %v1508_v54 }
  0x73   :  { %v742_v46 = vpack.c.bf16 %v480_v27, %v465_v48  ;;  %v499_v60 = vmul.f32 %v836_v39, %v498_v52  ;;  %v838_v20 = vpop.eup %837  ;;  %v520_v2 = vand.u32 2147483647, %v1508_v54  ;;  %v1573_v0 = vadd.f32 1.0, %v1538_v10 }
  0x74   :  { %v489_v21 = vsel %vm1545_vm3, %v834_v4, %v485_v58  ;;  %v512_v5 = vmul.f32 %v838_v20, %v1508_v54  ;;  %v522_v11 = vand.u32 2147483648, %v1508_v54  ;;  %841 = vrcp.f32 %v1554_v3 }
  0x75   :  { %774 = vst [vmem:[#allocation5 + $0x58] sm:$0xff] %v742_v46   ;;  %v500_v57 = vadd.f32 %v836_v39, %v499_v60  ;;  %v494_v8 = vsel %vm1549_vm4, %v493_v56, %v489_v21  ;;  %v1579_v17 = vmul.f32 %v55_v12, %v55_v12  ;;  %vm517_vm7 = vweird.f32 %v838_v20 }
  0x76   :  { %v840_v18 = vpop.eup %839  ;;  %v495_v30 = vmul.f32 %v494_v8, %v1435_v23  ;;  %v513_v59 = vsub.f32 1.0, %v512_v5  ;;  %v535_v25 = vand.u32 2147483647, %v1524_v41  ;;  %v537_v28 = vand.u32 2147483648, %v1524_v41  ;;  %vm1597_vm11 = vmor %vm516_vm6, %vm517_vm7 }
  0x77   :  { %v504_v19 = vsel %vm1559_vm5, %v836_v39, %v500_v57  ;;  %v527_v22 = vmul.f32 %v840_v18, %v1524_v41  ;;  %vm1590_vm10 = vcmp.eq.f32.partialorder %v520_v2, 8.507059e+37  ;;  %843 = vrcp.f32 %v1573_v0 }
  0x78   :  { %v509_v24 = vsel %vm1563_vm9, %v508_v1, %v504_v19  ;;  %v514_v51 = vmul.f32 %v838_v20, %v513_v59  ;;  %v523_v53 = vor.u32 1.1754944e-38, %v522_v11  ;;  %vm531_vm12 = vweird.f32 %v1524_v41 }
  0x79   :  { %v510_v38 = vmul.f32 %v509_v24, %v1464_v14  ;;  %v528_v33 = vsub.f32 1.0, %v527_v22  ;;  %vm532_vm13 = vweird.f32 %v840_v18  ;;  %v1602_v35 = vmul.f32 %v56_v16, %v56_v16 }
  0x7a   :  { %v515_v14 = vadd.f32 %v838_v20, %v514_v51  ;;  %v1605_v4 = vadd.f32 1.0, %v1579_v17  ;;  %v842_v36 = vpop.eup %841  ;;  %vm1607_vm14 = vcmp.eq.f32.partialorder %v535_v25, 8.507059e+37  ;;  %v538_v6 = vor.u32 1.1754944e-38, %v537_v28  ;;  %vm1613_vm15 = vmor %vm531_vm12, %vm532_vm13 }
  0x7b   :  { %v747_v34 = vpack.c.bf16 %v510_v38, %v495_v30  ;;  %v529_v37 = vmul.f32 %v840_v18, %v528_v33  ;;  %v542_v26 = vmul.f32 %v842_v36, %v1554_v3  ;;  %v552_v40 = vand.u32 2147483648, %v1554_v3 }
  0x7c   :  { %v519_v61 = vsel %vm1597_vm11, %v838_v20, %v515_v14  ;;  %v1620_v41 = vadd.f32 1.0, %v1602_v35  ;;  %vm546_vm8 = vweird.f32 %v1554_v3  ;;  %845 = vrcp.f32 %v1605_v4 }
  0x7d   :  { %775 = vst [vmem:[#allocation5 + $0x60] sm:$0xff] %v747_v34   ;;  %v524_v43 = vsel %vm1590_vm10, %v523_v53, %v519_v61  ;;  %v530_v39 = vadd.f32 %v840_v18, %v529_v37  ;;  %v844_v44 = vpop.eup %843  ;;  %v543_v48 = vsub.f32 1.0, %v542_v26  ;;  %vm547_vm0 = vweird.f32 %v842_v36 }
  0x7e   :  { %v550_v49 = vand.u32 2147483647, %v1554_v3  ;;  %v565_v9 = vand.u32 2147483647, %v1573_v0  ;;  %v525_v47 = vmul.f32 %v524_v43, %v1484_v13  ;;  %v557_v50 = vmul.f32 %v844_v44, %v1573_v0  ;;  %vm1639_vm1 = vmor %vm546_vm8, %vm547_vm0 }
  0x7f   :  { %v534_v32 = vsel %vm1613_vm15, %v840_v18, %v530_v39  ;;  %847 = vrcp.f32 %v1620_v41  ;;  %v544_v7 = vmul.f32 %v842_v36, %v543_v48  ;;  %v553_v52 = vor.u32 1.1754944e-38, %v552_v40 }
  0x80   :  { %v539_v27 = vsel %vm1607_vm14, %v538_v6, %v534_v32  ;;  %v567_v31 = vand.u32 2147483648, %v1573_v0  ;;  %v558_v56 = vsub.f32 1.0, %v557_v50  ;;  %vm561_vm2 = vweird.f32 %v1573_v0 }
  0x81   :  { %v540_v42 = vmul.f32 %v539_v27, %v1504_v15  ;;  %vm562_vm3 = vweird.f32 %v844_v44  ;;  %v545_v46 = vadd.f32 %v842_v36, %v544_v7  ;;  %vm551_vm4 = vcmp.eq.f32.partialorder %v550_v49, 8.507059e+37 }
  0x82   :  { %v846_v58 = vpop.eup %845  ;;  %v559_v12 = vmul.f32 %v844_v44, %v558_v56  ;;  %vm1644_vm5 = vcmp.eq.f32.partialorder %v565_v9, 8.507059e+37  ;;  %vm1650_vm9 = vmor %vm561_vm2, %vm562_vm3  ;;  %v568_v62 = vor.u32 1.1754944e-38, %v567_v31  ;;  %vm576_vm6 = vweird.f32 %v1605_v4 }
  0x83   :  { %v752_v60 = vpack.c.bf16 %v540_v42, %v525_v47  ;;  %v549_v15 = vsel %vm1639_vm1, %v842_v36, %v545_v46  ;;  %v572_v63 = vmul.f32 %v846_v58, %v1605_v4  ;;  %v580_v57 = vand.u32 2147483647, %v1605_v4 }
  0x84   :  { %v554_v2 = vsel %vm551_vm4, %v553_v52, %v549_v15  ;;  %v560_v21 = vadd.f32 %v844_v44, %v559_v12  ;;  %v582_v5 = vand.u32 2147483648, %v1605_v4  ;;  %vm577_vm7 = vweird.f32 %v846_v58 }
  0x85   :  { %v848_v1 = vpop.eup %847  ;;  %776 = vst [vmem:[#allocation5 + $0x68] sm:$0xff] %v752_v60   ;;  %v573_v0 = vsub.f32 1.0, %v572_v63  ;;  %vm591_vm10 = vweird.f32 %v1620_v41  ;;  %v555_v11 = vmul.f32 %v554_v2, %v1529_v45  ;;  %v595_v30 = vand.u32 2147483647, %v1620_v41  ;;  %vm578_vm12 = vmor %vm576_vm6, %vm577_vm7 }
  0x86   :  { %v587_v8 = vmul.f32 %v848_v1, %v1620_v41  ;;  %v564_v18 = vsel %vm1650_vm9, %v844_v44, %v560_v21  ;;  %v597_v19 = vand.u32 2147483648, %v1620_v41  ;;  %vm592_vm11 = vweird.f32 %v848_v1 }
  0x87   :  { %v569_v59 = vsel %vm1644_vm5, %v568_v62, %v564_v18  ;;  %v574_v24 = vmul.f32 %v846_v58, %v573_v0  ;;  %v583_v28 = vor.u32 1.1754944e-38, %v582_v5  ;;  %vm581_vm13 = vcmp.eq.f32.partialorder %v580_v57, 8.507059e+37  ;;  %vm593_vm14 = vmor %vm591_vm10, %vm592_vm11 }
  0x88   :  { %v588_v22 = vsub.f32 1.0, %v587_v8  ;;  %v570_v25 = vmul.f32 %v569_v59, %v1538_v10  ;;  %v598_v51 = vor.u32 1.1754944e-38, %v597_v19  ;;  %vm596_vm15 = vcmp.eq.f32.partialorder %v595_v30, 8.507059e+37 }
  0x89   :  { %v575_v45 = vadd.f32 %v846_v58, %v574_v24 }
  0x8a   :  { %v589_v16 = vmul.f32 %v848_v1, %v588_v22  ;;  %v757_v38 = vpack.c.bf16 %v570_v25, %v555_v11 }
  0x8b   :  { %v579_v23 = vsel %vm578_vm12, %v846_v58, %v575_v45 }
  0x8c   :  { %v590_v29 = vadd.f32 %v848_v1, %v589_v16  ;;  %777 = vst [vmem:[#allocation5 + $0x70] sm:$0xff] %v757_v38   ;;  %v584_v53 = vsel %vm581_vm13, %v583_v28, %v579_v23 }
  0x8d   :  { %v585_v33 = vmul.f32 %v584_v53, %v1579_v17 }
  0x8e   :  { %v594_v10 = vsel %vm593_vm14, %v848_v1, %v590_v29 }
  0x8f   :  { %v599_v34 = vsel %vm596_vm15, %v598_v51, %v594_v10 }
  0x90   :  { %v600_v14 = vmul.f32 %v599_v34, %v1602_v35 }
  0x92   :  { %v762_v4 = vpack.c.bf16 %v600_v14, %v585_v33 }
  0x94   :  { %778 = vst [vmem:[#allocation5 + $0x78] sm:$0xff] %v762_v4  }
  0x95   :  { %677 = dma.vmem_to_hbm [thread:$0]  %s670_s13, 2048, %s672_s16, [#allocation4], %s905_s17, %s905_s17, %s906_s18  }
  0x96   :  { %899 = dma.done.wait [#allocation4], 2048  }
  0x97   :  { %900 = vsyncadd [#allocation4], 4294965248 }
  0x98   :  { %682 = vsyncpa [#allocation3], 1 }
  0x99   :  { %683 = vsyncpa [#allocation4], 1 }

</bundles_post_ra>
